<compile_context>
chip_gen: v5e
topology: v5e:2x2
jax: 0.10.0
libtpu: 0.0.40
codegen_flags: <defaults>
</compile_context>

<pallas_src>
import functools
import math

import jax
import jax.numpy as jnp
from jax.experimental import pallas as pl
from jax.experimental.pallas import tpu as pltpu

_LANE = 128
_SUBLANE = 8
# ~2 MiB of *padded* VMEM per input block -> ~4 MiB double-buffered, safe on
# every generation while still amortizing the ~0.35us/step grid overhead.
_TARGET_BLOCK_BYTES = 2 * 1024 * 1024


def _pad_up(n, m):
    return ((n + m - 1) // m) * m


def _padded_block_bytes(block_shape, itemsize):
    """VMEM footprint of a block, accounting for (sublane, lane) padding."""
    shape = list(block_shape)
    sub_pack = max(1, 32 // (8 * itemsize)) * _SUBLANE  # 8 f32 / 16 bf16 / 32 i8
    shape[-1] = _pad_up(shape[-1], _LANE)
    if len(shape) >= 2:
        shape[-2] = _pad_up(shape[-2], sub_pack)
    return math.prod(shape) * itemsize


def _choose_tb(B, img_dims, itemsize):
    """Largest divisor TB of B whose (TB, *img_dims) *padded* block fits."""
    divisors = [d for d in range(1, B + 1) if B % d == 0]
    fits = [d for d in divisors
            if _padded_block_bytes((d,) + tuple(img_dims), itemsize)
            <= _TARGET_BLOCK_BYTES]
    # TB == 1 always divides B.
    # TODO(synk): tile along H (seam handled via halo/mask) for single images
    # whose padded footprint alone exceeds the VMEM budget.
    return max(fits) if fits else 1


def _grad_sum_kernel(y_ref, sdy_ref, sdx_ref, *, penalty, dy_axis, dy_shift,
                     dx_axis, dx_shift, num_cores, g_per_core, g_total):
    """Accumulate lane-parallel per-position partial sums of |dy| and |dx|."""
    c = pl.program_id(0)
    g = pl.program_id(1)

    @pl.when(g == 0)
    def _():
        sdy_ref[...] = jnp.zeros_like(sdy_ref)
        sdx_ref[...] = jnp.zeros_like(sdx_ref)

    def _accumulate():
        y = y_ref[...].astype(jnp.float32)

        def add_diff(acc_ref, axis, shift):
            n = y.shape[axis]
            k = shift % n
            # value at logical index (i + k) mod n along `axis` (XLU roll;
            # wrap-around pairs are excluded in the wrapper, so no mask here).
            y_next = pltpu.roll(y, n - k, axis=axis) if k else y
            d = y_next - y
            if penalty == "l2":
                d = d * d                 # (a-b)^2 needs no abs
            else:
                d = jnp.abs(d)
            acc_ref[...] += jnp.sum(d, axis=0, keepdims=True)

        add_diff(sdy_ref, dy_axis, dy_shift)
        add_diff(sdx_ref, dx_axis, dx_shift)

    if num_cores * g_per_core == g_total:
        _accumulate()                      # even split: no guard needed
    else:
        # Uneven megacore split: the second core's last step is a duplicated
        # block -- skip its accumulation.
        pl.when(c * g_per_core + g < g_total)(_accumulate)


def grad_loss(y_pred, penalty="l1", loss_mult=None):
    """2-D spatial gradient loss matching the PyTorch `Grad` module."""
    N, C, H, W = y_pred.shape
    B = N * C
    itemsize = y_pred.dtype.itemsize

    if W < _LANE:
        # Lane-dense repack: one image per 1-D lane row of H*W elements.
        img_dims = (H * W,)
        y2 = y_pred.reshape(B, H * W)
        dy_axis, dy_shift = 1, W           # next row == +W in flattened image
        dx_axis, dx_shift = 1, 1           # next col == +1
    else:
        # Collapsing (N, C) -> B is always free; keep the (H, W) layout.
        img_dims = (H, W)
        y2 = y_pred.reshape(B, H, W)
        dy_axis, dy_shift = 1, 1           # sublane roll along H
        dx_axis, dx_shift = 2, 1           # lane roll along W

    TB = _choose_tb(B, img_dims, itemsize)
    g_total = B // TB

    # v7x megacore: split blocks across both TensorCores whenever there is
    # more than one block (uneven counts handled in-kernel).  Harmless on
    # single-core v5e/v6e.
    nc = 2 if g_total >= 2 else 1
    g_per_core = pl.cdiv(g_total, nc)

    in_block = (TB,) + img_dims
    acc_block = (1,) + img_dims
    acc_shape = (nc,) + img_dims
    n_img_dims = len(img_dims)

    def in_index(c, g):
        # Tail overhang (odd split) re-fetches block 0; its accumulation is
        # masked off in the kernel.
        blk = (c * g_per_core + g) % g_total
        return (blk,) + (0,) * n_img_dims

    def out_index(c, g):
        return (c,) + (0,) * n_img_dims

    # Explicit VMEM budget from *padded* sizes: 2x (double-buffered) input
    # block + accumulator outputs + headroom for Mosaic internal scratch.
    in_bytes = _padded_block_bytes(in_block, itemsize)
    acc_bytes = _padded_block_bytes(acc_block, 4)
    vmem_need = 2 * in_bytes + 4 * acc_bytes + (2 << 20)
    vmem_limit = int(min(max(vmem_need, 8 << 20), 64 << 20))

    kernel = functools.partial(
        _grad_sum_kernel, penalty=penalty,
        dy_axis=dy_axis, dy_shift=dy_shift,
        dx_axis=dx_axis, dx_shift=dx_shift,
        num_cores=nc, g_per_core=g_per_core, g_total=g_total)

    n_elems = B * H * W
    cost = pl.CostEstimate(
        flops=int(6 * n_elems),
        transcendentals=0,
        bytes_accessed=int(n_elems * itemsize + 2 * nc * H * W * 4))

    sdy, sdx = pl.pallas_call(
        kernel,
        out_shape=(jax.ShapeDtypeStruct(acc_shape, jnp.float32),
                   jax.ShapeDtypeStruct(acc_shape, jnp.float32)),
        grid_spec=pltpu.PrefetchScalarGridSpec(
            num_scalar_prefetch=0,
            grid=(nc, g_per_core),
            in_specs=[pl.BlockSpec(in_block, in_index)],
            out_specs=(pl.BlockSpec(acc_block, out_index),
                       pl.BlockSpec(acc_block, out_index)),
        ),
        compiler_params=pltpu.CompilerParams(
            dimension_semantics=("parallel", "arbitrary"),
            vmem_limit_bytes=vmem_limit,
        ),
        cost_estimate=cost,
    )(y2)

    # Per-(h, w) position partial sums; drop the wrap-around positions
    # (last row for dy, last column for dx) and take the means.
    sdy = sdy.reshape(nc, H, W)
    sdx = sdx.reshape(nc, H, W)
    sum_dy = jnp.sum(sdy[:, : H - 1, :])
    sum_dx = jnp.sum(sdx[:, :, : W - 1])

    # NB: H == 1 or W == 1 yields an empty diff -> nan, same as torch.mean
    # of an empty tensor.
    mean_dy = sum_dy / jnp.float32(B * (H - 1) * W)
    mean_dx = sum_dx / jnp.float32(B * H * (W - 1))
    grad = (mean_dx + mean_dy) / 2.0
    if loss_mult is not None:
        grad = grad * loss_mult
    return grad


def _grad_loss_ref(y_pred, penalty="l1", loss_mult=None):
    dy = jnp.abs(y_pred[:, :, 1:, :] - y_pred[:, :, :-1, :])
    dx = jnp.abs(y_pred[:, :, :, 1:] - y_pred[:, :, :, :-1])
    if penalty == "l2":
        dy = dy * dy
        dx = dx * dx
    d = jnp.mean(dx) + jnp.mean(dy)
    grad = d / 2.0
    if loss_mult is not None:
        grad = grad * loss_mult
    return grad


if __name__ == "__main__":
    key = jax.random.PRNGKey(0)

    # flow-field-like input: batch=2, channels=2 (2-D displacement), 16x16
    # (exercises the lane-dense W < 128 path)
    y_small = jax.random.normal(key, (2, 2, 16, 16), dtype=jnp.float32)
    out_l1 = grad_loss(y_small, penalty="l1")
    out_l2 = grad_loss(y_small, penalty="l2", loss_mult=0.5)

    # wide input (exercises the direct (B, H, W) path with W >= 128)
    y_wide = jax.random.normal(jax.random.PRNGKey(1), (1, 2, 8, 128),
                               dtype=jnp.float32)
    out_w = grad_loss(y_wide, penalty="l1", loss_mult=2.0)

    jax.block_until_ready((out_l1, out_l2, out_w))

    ref_l1 = _grad_loss_ref(y_small, penalty="l1")
    ref_l2 = _grad_loss_ref(y_small, penalty="l2", loss_mult=0.5)
    ref_w = _grad_loss_ref(y_wide, penalty="l1", loss_mult=2.0)

    assert jnp.allclose(out_l1, ref_l1, rtol=1e-5, atol=1e-6), (out_l1, ref_l1)
    assert jnp.allclose(out_l2, ref_l2, rtol=1e-5, atol=1e-6), (out_l2, ref_l2)
    assert jnp.allclose(out_w, ref_w, rtol=1e-5, atol=1e-6), (out_w, ref_w)

    print("KERNEL_OK")
</pallas_src>

<mosaic_0001>
module attributes {stable_mosaic.version = 11 : i64} {
  func.func @_grad_sum_kernel(%arg0: i32, %arg1: i32, %arg2: memref<4x256xf32, #tpu.memory_space<vmem>>, %arg3: memref<1x256xf32, #tpu.memory_space<vmem>>, %arg4: memref<1x256xf32, #tpu.memory_space<vmem>>) attributes {dimension_semantics = [#tpu.dimension_semantics<parallel>, #tpu.dimension_semantics<arbitrary>], iteration_bounds = array<i64: 1, 1>, scalar_prefetch = 0 : i64, scratch_operands = 0 : i64, tpu.core_type = #tpu.core_type<tc>, window_params = [{transform_indices = @transform_0, window_bounds = array<i64: 4, 256>}, {transform_indices = @transform_1, window_bounds = array<i64: 1, 256>}, {transform_indices = @transform_2, window_bounds = array<i64: 1, 256>}]} {
    %c0_i32 = arith.constant 0 : i32
    %0 = arith.cmpi eq, %arg1, %c0_i32 : i32
    %1 = arith.extui %0 : i1 to i32
    %c0_i32_0 = arith.constant 0 : i32
    %2 = arith.cmpi ne, %1, %c0_i32_0 : i32
    scf.if %2 {
      %cst_11 = arith.constant 0.000000e+00 : f32
      %20 = vector.broadcast %cst_11 : f32 to vector<1x256xf32>
      %c0_12 = arith.constant 0 : index
      %c0_13 = arith.constant 0 : index
      %21 = vector.load %arg3[%c0_12, %c0_13] : memref<1x256xf32, #tpu.memory_space<vmem>>, vector<1x256xf32>
      tpu.vector_store %arg3[%c0_12, %c0_13], %20 {strides = array<i32>} : memref<1x256xf32, #tpu.memory_space<vmem>>, vector<1x256xf32>,
      %cst_14 = arith.constant 0.000000e+00 : f32
      %22 = vector.broadcast %cst_14 : f32 to vector<1x256xf32>
      %c0_15 = arith.constant 0 : index
      %c0_16 = arith.constant 0 : index
      %23 = vector.load %arg4[%c0_15, %c0_16] : memref<1x256xf32, #tpu.memory_space<vmem>>, vector<1x256xf32>
      tpu.vector_store %arg4[%c0_15, %c0_16], %22 {strides = array<i32>} : memref<1x256xf32, #tpu.memory_space<vmem>>, vector<1x256xf32>,
    } else {
    }
    %c0 = arith.constant 0 : index
    %c0_1 = arith.constant 0 : index
    %3 = vector.load %arg2[%c0, %c0_1] : memref<4x256xf32, #tpu.memory_space<vmem>>, vector<4x256xf32>
    %c240_i32 = arith.constant 240 : i32
    %4 = tpu.dynamic_rotate %3 by %c240_i32 dim 1 : vector<4x256xf32>, i32 -> vector<4x256xf32>
    %5 = arith.subf %4, %3 : vector<4x256xf32>
    %6 = math.absf %5 : vector<4x256xf32>
    %c0_2 = arith.constant 0 : index
    %c0_3 = arith.constant 0 : index
    %7 = vector.load %arg3[%c0_2, %c0_3] : memref<1x256xf32, #tpu.memory_space<vmem>>, vector<1x256xf32>
    %cst = arith.constant dense<0.000000e+00> : vector<256xf32>
    %8 = vector.multi_reduction <add>, %6, %cst [0] : vector<4x256xf32> to vector<256xf32>
    %9 = vector.shape_cast %8 : vector<256xf32> to vector<1x256xf32>
    %10 = arith.addf %7, %9 : vector<1x256xf32>
    %c0_4 = arith.constant 0 : index
    %c0_5 = arith.constant 0 : index
    %11 = vector.load %arg3[%c0_4, %c0_5] : memref<1x256xf32, #tpu.memory_space<vmem>>, vector<1x256xf32>
    tpu.vector_store %arg3[%c0_4, %c0_5], %10 {strides = array<i32>} : memref<1x256xf32, #tpu.memory_space<vmem>>, vector<1x256xf32>,
    %c255_i32 = arith.constant 255 : i32
    %12 = tpu.dynamic_rotate %3 by %c255_i32 dim 1 : vector<4x256xf32>, i32 -> vector<4x256xf32>
    %13 = arith.subf %12, %3 : vector<4x256xf32>
    %14 = math.absf %13 : vector<4x256xf32>
    %c0_6 = arith.constant 0 : index
    %c0_7 = arith.constant 0 : index
    %15 = vector.load %arg4[%c0_6, %c0_7] : memref<1x256xf32, #tpu.memory_space<vmem>>, vector<1x256xf32>
    %cst_8 = arith.constant dense<0.000000e+00> : vector<256xf32>
    %16 = vector.multi_reduction <add>, %14, %cst_8 [0] : vector<4x256xf32> to vector<256xf32>
    %17 = vector.shape_cast %16 : vector<256xf32> to vector<1x256xf32>
    %18 = arith.addf %15, %17 : vector<1x256xf32>
    %c0_9 = arith.constant 0 : index
    %c0_10 = arith.constant 0 : index
    %19 = vector.load %arg4[%c0_9, %c0_10] : memref<1x256xf32, #tpu.memory_space<vmem>>, vector<1x256xf32>
    tpu.vector_store %arg4[%c0_9, %c0_10], %18 {strides = array<i32>} : memref<1x256xf32, #tpu.memory_space<vmem>>, vector<1x256xf32>,
    return
  }
  func.func @transform_0(%arg0: i32, %arg1: i32) -> (i32, i32) {
    %c1_i32 = arith.constant 1 : i32
    %0 = arith.muli %arg0, %c1_i32 : i32
    %1 = arith.addi %0, %arg1 : i32
    %c1_i32_0 = arith.constant 1 : i32
    %c0_i32 = arith.constant 0 : i32
    %2 = arith.cmpi eq, %c1_i32_0, %c0_i32 : i32
    %c1_i32_1 = arith.constant 1 : i32
    %3 = arith.select %2, %c1_i32_1, %c1_i32_0 : i32
    %4 = arith.remsi %1, %3 : i32
    %c0_i32_2 = arith.constant 0 : i32
    %5 = arith.cmpi ne, %4, %c0_i32_2 : i32
    %c0_i32_3 = arith.constant 0 : i32
    %6 = arith.cmpi slt, %4, %c0_i32_3 : i32
    %c0_i32_4 = arith.constant 0 : i32
    %7 = arith.cmpi slt, %3, %c0_i32_4 : i32
    %8 = arith.xori %6, %7 : i1
    %9 = arith.andi %8, %5 : i1
    %10 = arith.addi %4, %3 : i32
    %11 = arith.select %9, %10, %4 : i32
    %c0_i32_5 = arith.constant 0 : i32
    %c0_i32_6 = arith.constant 0 : i32
    return %11, %c0_i32_5 : i32, i32
  }
  func.func @transform_1(%arg0: i32, %arg1: i32) -> (i32, i32) {
    %c0_i32 = arith.constant 0 : i32
    %c0_i32_0 = arith.constant 0 : i32
    return %arg0, %c0_i32 : i32, i32
  }
  func.func @transform_2(%arg0: i32, %arg1: i32) -> (i32, i32) {
    %c0_i32 = arith.constant 0 : i32
    %c0_i32_0 = arith.constant 0 : i32
    return %arg0, %c0_i32 : i32, i32
  }
}

</mosaic_0001>

<bundles_post_ra>
// kernel: tpu_custom_call.1
= control target key start
LH: loop header
LB: loop body
LE: loop exit
PB: predicated region body
PF: predicated region fallthrough
CT: control target
= control target key end

     0   :  { %8 = vsyncpa [#allocation3], 0  ;;  %s297_s0 = inlined_call_operand.hbm [shape: f32[4,256], index: 0, kind: input, shape index: {}]   ;;  %s298_s1 = inlined_call_operand.hbm [shape: f32[1,256], index: 1, kind: output, shape index: {0}]   ;;  %s299_s2 = inlined_call_operand.hbm [shape: f32[1,256], index: 2, kind: output, shape index: {1}]  }
   0x1   :  { %9 = vsyncpa [#allocation4], 0 }
   0x2   :  { %10 = vsyncpa [#allocation7], 0  ;;  %s16_s11 = sshll.u32 %s297_s0, 4  ;;  %s249_s12 = smov [#allocation2]   ;;  %s17_s11 = int_to_ptr.hbm [resolvable:$true] %s16_s11 }
   0x3   :  { %s18_s13 = sshll.u32 %s249_s12, 4  ;;  %s19_s13 = int_to_ptr.vmem [resolvable:$true] %s18_s13 }
   0x4   :  { %21 = dma.hbm_to_vmem [thread:$0]  %s17_s11, 128, %s19_s13, [#allocation3]  }
   0x5   :  { %243 = dma.done.wait [#allocation3], 128  }
   0x6   :  { %244 = vsyncadd [#allocation3], 4294967168  ;;  %v36_v0 = vld [vmem:[#allocation2] sm:$0xff]  ;;  %s250_s14 = smov 112   ;;  %s251_s0 = smov 127   ;;  %v30_v7 = vlaneseq  ;;  %v252_v9 = vmov 0.0  }
   0x7   :  { %38 = vst [vmem:[#allocation1] ss:$2 sm:$0xff] %v36_v0  ;;  %vm62_vm2 = vcmask 1043456   ;;  %vm80_vm4 = vcmask 1040384   ;;  %s253_s15 = smov [#allocation5]   ;;  %s139_s19 = sshll.u32 %s298_s1, 4  ;;  %s140_s19 = int_to_ptr.hbm [resolvable:$true] %s139_s19 }
   0x8   :  { %vm273_vm0 = vcmp.lt.s32.totalorder %v30_v7, 256  ;;  %v48_v11 = vand.u32 127, %v30_v7  ;;  %s137_s16 = sshll.u32 %s253_s15, 4  ;;  %s254_s1 = smov [#allocation6]   ;;  %s138_s16 = int_to_ptr.vmem [resolvable:$true] %s137_s16 }
   0x9   :  { %34 = vst.msk [vmem:[#allocation5] sm:$0x3] %vm273_vm0, %v252_v9  ;;  %s148_s20 = sshll.u32 %s254_s1, 4  ;;  %s150_s23 = sshll.u32 %s299_s2, 4  ;;  %s149_s20 = int_to_ptr.vmem [resolvable:$true] %s148_s20  ;;  %s151_s23 = int_to_ptr.hbm [resolvable:$true] %s150_s23 }
   0xa   :  { %35 = vst.msk [vmem:[#allocation6] sm:$0x3] %vm273_vm0, %v252_v9  ;;  %vm49_vm1 = vcmp.lt.s32.totalorder %v48_v11, 112  ;;  %vm98_vm3 = vcmp.lt.s32.totalorder %v48_v11, 127 }
   0xe   :  { %v39_v1 = vld.sshfl [vmem:[#allocation1] sm:$0xff pattern:$0x75316420]  ;;  %v40_v2 = vld.sshfl [vmem:[#allocation1 + $0x8] sm:$0xff pattern:$0x75316420] }
   0xf   :  { %43 = vrot.lane.b32.xlu0 %v39_v1, %s250_s14  ;;  %52 = vst [vmem:[#allocation1] ss:$2 sm:$0xff] %v36_v0 }
  0x10   :  { %v61_v42 = vld [vmem:[#allocation5] sm:$0x3] }
  0x11   :  { %v110_v62 = vld [vmem:[#allocation6] sm:$0x3] }
  0x16   :  { %v53_v3 = vld.sshfl [vmem:[#allocation1] sm:$0xff pattern:$0x75316420]  ;;  %v54_v4 = vld.sshfl [vmem:[#allocation1 + $0x8] sm:$0xff pattern:$0x75316420] }
  0x17   :  { %45 = vrot.lane.b32.xlu0 %v40_v2, %s250_s14  ;;  %89 = vst [vmem:[#allocation1] ss:$2 sm:$0xff] %v36_v0 }
  0x1e   :  { %v90_v5 = vld.sshfl [vmem:[#allocation1] sm:$0xff pattern:$0x75316420]  ;;  %v91_v6 = vld.sshfl [vmem:[#allocation1 + $0x8] sm:$0xff pattern:$0x75316420] }
  0x1f   :  { %94 = vrot.lane.b32.xlu1 %v90_v5, %s251_s0  ;;  %101 = vst [vmem:[#allocation1] ss:$2 sm:$0xff] %v36_v0 }
  0x26   :  { %v102_v30 = vld.sshfl [vmem:[#allocation1] sm:$0xff pattern:$0x75316420]  ;;  %v103_v33 = vld.sshfl [vmem:[#allocation1 + $0x8] sm:$0xff pattern:$0x75316420] }
  0x27   :  { %96 = vrot.lane.b32.xlu1 %v91_v6, %s251_s0 }
  0x81   :  { %v44_v10 = vpop.permute.xlu0 %43 }
  0x89   :  { %v46_v12 = vpop.permute.xlu0 %45 }
  0x8a   :  { %v50_v13 = vsel %vm49_vm1, %v44_v10, %v46_v12  ;;  %v51_v14 = vsel %vm49_vm1, %v46_v12, %v44_v10 }
  0x8b   :  { %v57_v15 = vsub.f32 %v50_v13, %v53_v3  ;;  %v58_v16 = vsub.f32 %v51_v14, %v54_v4 }
  0x8d   :  { %v59_v17 = vand.u32 2147483647, %v57_v15  ;;  %v60_v18 = vand.u32 2147483647, %v58_v16 }
  0x8f   :  { %v63_v19 = vsel %vm62_vm2, %v59_v17, 0.0  ;;  %v70_v20 = vsel %vm62_vm2, %v60_v18, 0.0 }
  0x90   :  { %v64_v21 = vrot.slane %v63_v19, 4  ;;  %v71_v22 = vrot.slane %v70_v20, 4 }
  0x91   :  { %v95_v23 = vpop.permute.xlu1 %94 }
  0x92   :  { %v65_v24 = vadd.f32 %v64_v21, %v63_v19  ;;  %v72_v25 = vadd.f32 %v71_v22, %v70_v20 }
  0x94   :  { %v66_v26 = vrot.slane %v65_v24, 2  ;;  %v73_v27 = vrot.slane %v72_v25, 2 }
  0x96   :  { %v67_v28 = vadd.f32 %v66_v26, %v65_v24  ;;  %v74_v29 = vadd.f32 %v73_v27, %v72_v25 }
  0x98   :  { %v68_v31 = vrot.slane %v67_v28, 1  ;;  %v75_v32 = vrot.slane %v74_v29, 1 }
  0x99   :  { %v97_v34 = vpop.permute.xlu1 %96 }
  0x9a   :  { %v69_v35 = vadd.f32 %v68_v31, %v67_v28  ;;  %v76_v36 = vadd.f32 %v75_v32, %v74_v29  ;;  %v99_v37 = vsel %vm98_vm3, %v95_v23, %v97_v34  ;;  %v100_v38 = vsel %vm98_vm3, %v97_v34, %v95_v23 }
  0x9b   :  { %v106_v39 = vsub.f32 %v99_v37, %v102_v30  ;;  %v107_v40 = vsub.f32 %v100_v38, %v103_v33 }
  0x9c   :  { %v79_v41 = vrot.slane %v76_v36, 7 }
  0x9d   :  { %v108_v43 = vand.u32 2147483647, %v106_v39  ;;  %v109_v44 = vand.u32 2147483647, %v107_v40 }
  0x9e   :  { %v81_v45 = vsel %vm80_vm4, %v69_v35, %v79_v41 }
  0x9f   :  { %v111_v46 = vsel %vm62_vm2, %v108_v43, 0.0  ;;  %v118_v47 = vsel %vm62_vm2, %v109_v44, 0.0  ;;  %v83_v48 = vadd.f32 %v81_v45, %v61_v42 }
  0xa0   :  { %v112_v49 = vrot.slane %v111_v46, 4  ;;  %v119_v50 = vrot.slane %v118_v47, 4 }
  0xa1   :  { %88 = vst.msk [vmem:[#allocation5] sm:$0x3] %vm273_vm0, %v83_v48 }
  0xa2   :  { %v113_v51 = vadd.f32 %v112_v49, %v111_v46  ;;  %v120_v52 = vadd.f32 %v119_v50, %v118_v47  ;;  %142 = dma.vmem_to_hbm [thread:$0]  %s138_s16, 32, %s140_s19, [#allocation4]  }
  0xa4   :  { %v114_v53 = vrot.slane %v113_v51, 2  ;;  %v121_v54 = vrot.slane %v120_v52, 2 }
  0xa6   :  { %v115_v55 = vadd.f32 %v114_v53, %v113_v51  ;;  %v122_v56 = vadd.f32 %v121_v54, %v120_v52 }
  0xa8   :  { %v116_v57 = vrot.slane %v115_v55, 1  ;;  %v123_v58 = vrot.slane %v122_v56, 1 }
  0xaa   :  { %v124_v59 = vadd.f32 %v123_v58, %v122_v56  ;;  %v117_v60 = vadd.f32 %v116_v57, %v115_v55 }
  0xac   :  { %v127_v61 = vrot.slane %v124_v59, 7 }
  0xae   :  { %v128_v63 = vsel %vm80_vm4, %v117_v60, %v127_v61 }
  0xaf   :  { %v130_v0 = vadd.f32 %v128_v63, %v110_v62 }
  0xb1   :  { %131 = vst.msk [vmem:[#allocation6] sm:$0x3] %vm273_vm0, %v130_v0 }
  0xb2   :  { %153 = dma.vmem_to_hbm [thread:$0]  %s149_s20, 32, %s151_s23, [#allocation7]  }
  0xb3   :  { %245 = dma.done.wait [#allocation4], 32  }
  0xb4   :  { %246 = vsyncadd [#allocation4], 4294967264 }
  0xb5   :  { %247 = dma.done.wait [#allocation7], 32  }
  0xb6   :  { %248 = vsyncadd [#allocation7], 4294967264 }
  0xb7   :  { %162 = vsyncpa [#allocation3], 1 }
  0xb8   :  { %163 = vsyncpa [#allocation4], 1 }
  0xb9   :  { %164 = vsyncpa [#allocation7], 1 }

</bundles_post_ra>
